<compile_context>
chip_gen: v7x
topology: tpu7x:2x2x1
jax: 0.10.0
libtpu: 0.0.40
codegen_flags: <defaults>
</compile_context>

<pallas_src>
import functools

import jax
import jax.numpy as jnp
from jax.experimental import pallas as pl
from jax.experimental.pallas import tpu as pltpu

LANE = 128  # feature dims padded to this so vregs/stores are lane-dense


def _round_up(x, m):
    return (x + m - 1) // m * m


def _vmem_limit_bytes():
    """Generation-aware scoped-VMEM limit (v5e/v6e: 128 MiB phys, v7x: 64 MiB)."""
    try:
        cap = int(pltpu.get_tpu_info().vmem_capacity_bytes)
    except Exception:
        cap = 64 * 1024 * 1024
    return max(32 * 1024 * 1024, min(cap * 3 // 4, 100 * 1024 * 1024))


# ----------------------------------------------------------------------------
# Kernels
# ----------------------------------------------------------------------------
def project_kernel(x_ref, wcat_ref, b_ref, pn_ref, ps_ref, *, f_out):
    """Per node tile: P = X_c @ [W_self | W_neigh] (one MXU matmul).

    pn_ref (bf16) <- P[:, f_out:]           (neighbor projection)
    ps_ref (f32)  <- P[:, :f_out] + bias    (self projection + bias)
    """
    p = jnp.dot(x_ref[...], wcat_ref[...], preferred_element_type=jnp.float32)
    pn_ref[...] = p[:, f_out:].astype(pn_ref.dtype)
    ps_ref[...] = p[:, :f_out] + b_ref[...]


def agg_rowslab_kernel(a_ref, pn_ref, ps_ref, o_ref, *, apply_relu):
    """1-D path: o[r] = A[r, :] @ P_neigh + P_self[r]  (P_neigh VMEM-resident)."""
    h = jnp.dot(a_ref[...], pn_ref[...], preferred_element_type=jnp.float32)
    h = h + ps_ref[...]
    if apply_relu:
        h = jnp.maximum(h, 0.0)
    o_ref[...] = h.astype(o_ref.dtype)


def agg_tiled_kernel(a_ref, pn_ref, ps_ref, o_ref, acc_ref, *, apply_relu):
    """2-D fallback: accumulate A[r, c] @ P_neigh[c] over reduction tiles c."""
    c = pl.program_id(1)

    @pl.when(c == 0)
    def _init():
        acc_ref[...] = jnp.zeros_like(acc_ref)

    acc_ref[...] += jnp.dot(a_ref[...], pn_ref[...],
                            preferred_element_type=jnp.float32)

    @pl.when(c == pl.num_programs(1) - 1)
    def _finalize():
        h = acc_ref[...] + ps_ref[...]
        if apply_relu:
            h = jnp.maximum(h, 0.0)
        o_ref[...] = h.astype(o_ref.dtype)


# ----------------------------------------------------------------------------
# pallas_call wrappers
# ----------------------------------------------------------------------------
def project(x_bf, w_cat, bias, *, tile, vmem_limit):
    n_pad, f_in = x_bf.shape
    f_out = w_cat.shape[1] // 2
    assert n_pad % tile == 0

    cost = pl.CostEstimate(
        flops=2 * n_pad * f_in * 2 * f_out,
        transcendentals=0,
        bytes_accessed=(x_bf.size * 2 + w_cat.size * 2 + bias.size * 4
                        + n_pad * f_out * (2 + 4)),
    )
    return pl.pallas_call(
        functools.partial(project_kernel, f_out=f_out),
        out_shape=(jax.ShapeDtypeStruct((n_pad, f_out), jnp.bfloat16),
                   jax.ShapeDtypeStruct((n_pad, f_out), jnp.float32)),
        grid_spec=pltpu.PrefetchScalarGridSpec(
            num_scalar_prefetch=0,
            grid=(n_pad // tile,),
            in_specs=[
                pl.BlockSpec((tile, f_in), lambda c: (c, 0)),          # X
                pl.BlockSpec((f_in, 2 * f_out), lambda c: (0, 0)),     # [Ws|Wn]
                pl.BlockSpec((1, f_out), lambda c: (0, 0)),            # bias
            ],
            out_specs=[
                pl.BlockSpec((tile, f_out), lambda c: (c, 0)),         # P_neigh
                pl.BlockSpec((tile, f_out), lambda c: (c, 0)),         # P_self
            ],
        ),
        compiler_params=pltpu.CompilerParams(
            dimension_semantics=("parallel",),
            vmem_limit_bytes=vmem_limit,
        ),
        cost_estimate=cost,
    )(x_bf, w_cat, bias)


def aggregate(a_bf, p_neigh, p_self, *, tile_r, tile_c, out_dtype, apply_relu,
              vmem_limit, force_tiled=False):
    n_pad = a_bf.shape[0]
    f_out = p_neigh.shape[1]
    assert n_pad % tile_r == 0 and n_pad % tile_c == 0

    out_bytes = 4 if out_dtype == jnp.float32 else 2
    cost = pl.CostEstimate(
        flops=2 * n_pad * n_pad * f_out,
        transcendentals=0,
        bytes_accessed=(a_bf.size * 2 + p_neigh.size * 2 + p_self.size * 4
                        + n_pad * f_out * out_bytes),
    )

    # Row-slab feasibility: A slab (double-buffered) + resident P_neigh
    # (conservatively counted twice) + P_self + output, all in VMEM.
    slab_bytes = (2 * tile_r * n_pad * 2
                  + 2 * n_pad * f_out * 2
                  + 2 * tile_r * f_out * 4
                  + 2 * tile_r * f_out * 4)
    use_rowslab = (not force_tiled) and slab_bytes <= vmem_limit // 2

    if use_rowslab:
        return pl.pallas_call(
            functools.partial(agg_rowslab_kernel, apply_relu=apply_relu),
            out_shape=jax.ShapeDtypeStruct((n_pad, f_out), out_dtype),
            grid_spec=pltpu.PrefetchScalarGridSpec(
                num_scalar_prefetch=0,
                grid=(n_pad // tile_r,),
                in_specs=[
                    pl.BlockSpec((tile_r, n_pad), lambda r: (r, 0)),   # A slab
                    pl.BlockSpec((n_pad, f_out), lambda r: (0, 0)),    # P_neigh (resident)
                    pl.BlockSpec((tile_r, f_out), lambda r: (r, 0)),   # P_self
                ],
                out_specs=pl.BlockSpec((tile_r, f_out), lambda r: (r, 0)),
            ),
            compiler_params=pltpu.CompilerParams(
                dimension_semantics=("parallel",),
                vmem_limit_bytes=vmem_limit,
            ),
            cost_estimate=cost,
        )(a_bf, p_neigh, p_self)

    # 2-D tiled fallback for graphs whose A row slab does not fit VMEM.
    return pl.pallas_call(
        functools.partial(agg_tiled_kernel, apply_relu=apply_relu),
        out_shape=jax.ShapeDtypeStruct((n_pad, f_out), out_dtype),
        grid_spec=pltpu.PrefetchScalarGridSpec(
            num_scalar_prefetch=0,
            grid=(n_pad // tile_r, n_pad // tile_c),
            in_specs=[
                pl.BlockSpec((tile_r, tile_c), lambda r, c: (r, c)),   # A tile
                pl.BlockSpec((tile_c, f_out), lambda r, c: (c, 0)),    # P_neigh
                pl.BlockSpec((tile_r, f_out), lambda r, c: (r, 0)),    # P_self
            ],
            out_specs=pl.BlockSpec((tile_r, f_out), lambda r, c: (r, 0)),
            scratch_shapes=[pltpu.VMEM((tile_r, f_out), jnp.float32)],
        ),
        compiler_params=pltpu.CompilerParams(
            dimension_semantics=("parallel", "arbitrary"),
            vmem_limit_bytes=vmem_limit,
        ),
        cost_estimate=cost,
    )(a_bf, p_neigh, p_self)


def graphsage_forward(a_bf, x_bf, params, *, n, h_feats, tile_r, tile_c,
                      force_tiled=False):
    vmem_limit = _vmem_limit_bytes()

    pn1, ps1 = project(x_bf, params["wcat1"], params["b1"],
                       tile=tile_r, vmem_limit=vmem_limit)
    h1 = aggregate(a_bf, pn1, ps1, tile_r=tile_r, tile_c=tile_c,
                   out_dtype=jnp.bfloat16, apply_relu=True,
                   vmem_limit=vmem_limit, force_tiled=force_tiled)

    pn2, ps2 = project(h1, params["wcat2"], params["b2"],
                       tile=tile_r, vmem_limit=vmem_limit)
    h2 = aggregate(a_bf, pn2, ps2, tile_r=tile_r, tile_c=tile_c,
                   out_dtype=jnp.float32, apply_relu=False,
                   vmem_limit=vmem_limit, force_tiled=force_tiled)
    return h2[:n, :h_feats]


# ----------------------------------------------------------------------------
# Params / reference
# ----------------------------------------------------------------------------
def init_params(key, in_feats, h_feats):
    ks = jax.random.split(key, 4)
    f_in_pad = _round_up(in_feats, LANE)
    f_h_pad = _round_up(h_feats, LANE)

    def glorot(k, fan_in, fan_out):
        scale = jnp.sqrt(6.0 / (fan_in + fan_out))
        return jax.random.uniform(k, (fan_in, fan_out), jnp.float32, -scale, scale)

    def pad2(w, rows, cols):
        return jnp.pad(w, ((0, rows - w.shape[0]), (0, cols - w.shape[1])))

    ws1 = pad2(glorot(ks[0], in_feats, h_feats), f_in_pad, f_h_pad)
    wn1 = pad2(glorot(ks[1], in_feats, h_feats), f_in_pad, f_h_pad)
    ws2 = pad2(glorot(ks[2], h_feats, h_feats), f_h_pad, f_h_pad)
    wn2 = pad2(glorot(ks[3], h_feats, h_feats), f_h_pad, f_h_pad)

    return {
        # [W_self | W_neigh] packed along the output axis -> one MXU matmul.
        "wcat1": jnp.concatenate([ws1, wn1], axis=1).astype(jnp.bfloat16),
        "wcat2": jnp.concatenate([ws2, wn2], axis=1).astype(jnp.bfloat16),
        "b1": jnp.zeros((1, f_h_pad), jnp.float32),
        "b2": jnp.zeros((1, f_h_pad), jnp.float32),
    }


def reference_forward(a_bf, x_bf, params, *, n, h_feats):
    """Pure-JAX reference mirroring the kernel's bf16/f32 dtype path."""
    hp = jax.lax.Precision.HIGHEST
    f32 = jnp.float32

    def layer(a, x, w_cat, b, relu):
        f_out = w_cat.shape[1] // 2
        p = jnp.dot(x.astype(f32), w_cat.astype(f32), precision=hp)
        pn = p[:, f_out:].astype(jnp.bfloat16)
        agg = jnp.dot(a.astype(f32), pn.astype(f32), precision=hp)
        h = agg + p[:, :f_out] + b
        return jnp.maximum(h, 0.0) if relu else h

    h1 = layer(a_bf, x_bf, params["wcat1"], params["b1"], True).astype(jnp.bfloat16)
    h2 = layer(a_bf, h1, params["wcat2"], params["b2"], False)
    return h2[:n, :h_feats]


if __name__ == "__main__":
    N = 64          # nodes
    IN_FEATS = 32   # input feature dim
    H_FEATS = 32    # hidden dim
    TILE_R = 256    # row tile (two row tiles -> both v7x TCs get work)
    TILE_C = 128    # reduction tile for the 2-D fallback path

    N_PAD = _round_up(N, 2 * TILE_R)      # -> 512: 2 row tiles
    F_IN_PAD = _round_up(IN_FEATS, LANE)

    key = jax.random.PRNGKey(0)
    k_adj, k_feat, k_param = jax.random.split(key, 3)

    # deterministic synthetic graph: sparse-ish random adjacency, no self-loops
    adj = (jax.random.uniform(k_adj, (N, N)) < 0.1).astype(jnp.float32)
    adj = adj * (1.0 - jnp.eye(N, dtype=jnp.float32))
    deg = jnp.sum(adj, axis=1, keepdims=True)
    a_norm = adj / jnp.maximum(deg, 1.0)   # row-normalized => matmul == mean agg

    # pad node axis to the grid tiles, features to 128 lanes; stream as bf16.
    # Invariant: padded columns of A are exactly zero, so padded rows of h
    # (which pick up relu(bias)) never leak into real rows.
    a_pad = jnp.zeros((N_PAD, N_PAD), jnp.float32).at[:N, :N].set(a_norm)
    a_bf = a_pad.astype(jnp.bfloat16)

    x = jax.random.normal(k_feat, (N, IN_FEATS), jnp.float32)
    x_pad = jnp.zeros((N_PAD, F_IN_PAD), jnp.float32).at[:N, :IN_FEATS].set(x)
    x_bf = x_pad.astype(jnp.bfloat16)

    params = init_params(k_param, IN_FEATS, H_FEATS)

    # Default: row-slab (1-D grid) aggregation path.
    out = graphsage_forward(a_bf, x_bf, params, n=N, h_feats=H_FEATS,
                            tile_r=TILE_R, tile_c=TILE_C)
    out = jax.block_until_ready(out)
    assert out.shape == (N, H_FEATS) and out.dtype == jnp.float32

    # Also exercise the 2-D tiled fallback (used for graphs too big for slabs).
    out_tiled = graphsage_forward(a_bf, x_bf, params, n=N, h_feats=H_FEATS,
                                  tile_r=TILE_R, tile_c=TILE_C, force_tiled=True)
    out_tiled = jax.block_until_ready(out_tiled)

    ref = reference_forward(a_bf, x_bf, params, n=N, h_feats=H_FEATS)
    assert jnp.allclose(out, ref, atol=2e-2, rtol=2e-2), (
        "rowslab max abs err = %f" % float(jnp.max(jnp.abs(out - ref))))
    assert jnp.allclose(out_tiled, ref, atol=2e-2, rtol=2e-2), (
        "tiled max abs err = %f" % float(jnp.max(jnp.abs(out_tiled - ref))))
    print("KERNEL_OK")
</pallas_src>

<mosaic_0001>
module attributes {stable_mosaic.version = 11 : i64} {
  func.func @project_kernel(%arg0: i32, %arg1: memref<256x128xbf16, #tpu.memory_space<vmem>>, %arg2: memref<128x256xbf16, #tpu.memory_space<vmem>>, %arg3: memref<1x128xf32, #tpu.memory_space<vmem>>, %arg4: memref<256x128xbf16, #tpu.memory_space<vmem>>, %arg5: memref<256x128xf32, #tpu.memory_space<vmem>>) attributes {dimension_semantics = [#tpu.dimension_semantics<parallel>], iteration_bounds = array<i64: 2>, scalar_prefetch = 0 : i64, scratch_operands = 0 : i64, tpu.core_type = #tpu.core_type<tc>, window_params = [{transform_indices = @transform_0, window_bounds = array<i64: 256, 128>}, {pipeline_mode = #tpu.pipeline_mode<synchronous>, transform_indices = @transform_1, window_bounds = array<i64: 128, 256>}, {pipeline_mode = #tpu.pipeline_mode<synchronous>, transform_indices = @transform_2, window_bounds = array<i64: 1, 128>}, {transform_indices = @transform_3, window_bounds = array<i64: 256, 128>}, {transform_indices = @transform_4, window_bounds = array<i64: 256, 128>}]} {
    %c0 = arith.constant 0 : index
    %c0_0 = arith.constant 0 : index
    %0 = vector.load %arg1[%c0, %c0_0] : memref<256x128xbf16, #tpu.memory_space<vmem>>, vector<256x128xbf16>
    %c0_1 = arith.constant 0 : index
    %c0_2 = arith.constant 0 : index
    %1 = vector.load %arg2[%c0_1, %c0_2] : memref<128x256xbf16, #tpu.memory_space<vmem>>, vector<128x256xbf16>
    %cst = arith.constant dense<0.000000e+00> : vector<256x256xf32>
    %2 = tpu.matmul %0, %1, %cst {dimension_numbers = #tpu.dot_dimension_numbers<[1], [0], [0], [1], [0, 0, 1, 1], [], []>} : vector<256x128xbf16>, vector<128x256xbf16>, vector<256x256xf32> -> vector<256x256xf32>
    %3 = vector.extract_strided_slice %2 {offsets = [0, 128], sizes = [256, 128], strides = [1, 1]} : vector<256x256xf32> to vector<256x128xf32>
    %4 = arith.truncf %3 : vector<256x128xf32> to vector<256x128xbf16>
    %c0_3 = arith.constant 0 : index
    %c0_4 = arith.constant 0 : index
    %5 = vector.load %arg4[%c0_3, %c0_4] : memref<256x128xbf16, #tpu.memory_space<vmem>>, vector<256x128xbf16>
    tpu.vector_store %arg4[%c0_3, %c0_4], %4 {strides = array<i32>} : memref<256x128xbf16, #tpu.memory_space<vmem>>, vector<256x128xbf16>,
    %6 = vector.extract_strided_slice %2 {offsets = [0, 0], sizes = [256, 128], strides = [1, 1]} : vector<256x256xf32> to vector<256x128xf32>
    %c0_5 = arith.constant 0 : index
    %c0_6 = arith.constant 0 : index
    %7 = vector.load %arg3[%c0_5, %c0_6] : memref<1x128xf32, #tpu.memory_space<vmem>>, vector<1x128xf32>
    %8 = vector.broadcast %7 : vector<1x128xf32> to vector<256x128xf32>
    %9 = arith.addf %6, %8 : vector<256x128xf32>
    %c0_7 = arith.constant 0 : index
    %c0_8 = arith.constant 0 : index
    %10 = vector.load %arg5[%c0_7, %c0_8] : memref<256x128xf32, #tpu.memory_space<vmem>>, vector<256x128xf32>
    tpu.vector_store %arg5[%c0_7, %c0_8], %9 {strides = array<i32>} : memref<256x128xf32, #tpu.memory_space<vmem>>, vector<256x128xf32>,
    return
  }
  func.func @transform_0(%arg0: i32) -> (i32, i32) {
    %c0_i32 = arith.constant 0 : i32
    %c0_i32_0 = arith.constant 0 : i32
    return %arg0, %c0_i32 : i32, i32
  }
  func.func @transform_1(%arg0: i32) -> (i32, i32) {
    %c0_i32 = arith.constant 0 : i32
    %c0_i32_0 = arith.constant 0 : i32
    %c0_i32_1 = arith.constant 0 : i32
    return %c0_i32, %c0_i32_0 : i32, i32
  }
  func.func @transform_2(%arg0: i32) -> (i32, i32) {
    %c0_i32 = arith.constant 0 : i32
    %c0_i32_0 = arith.constant 0 : i32
    %c0_i32_1 = arith.constant 0 : i32
    return %c0_i32, %c0_i32_0 : i32, i32
  }
  func.func @transform_3(%arg0: i32) -> (i32, i32) {
    %c0_i32 = arith.constant 0 : i32
    %c0_i32_0 = arith.constant 0 : i32
    return %arg0, %c0_i32 : i32, i32
  }
  func.func @transform_4(%arg0: i32) -> (i32, i32) {
    %c0_i32 = arith.constant 0 : i32
    %c0_i32_0 = arith.constant 0 : i32
    return %arg0, %c0_i32 : i32, i32
  }
}

</mosaic_0001>

<bundles_post_ra>
// kernel: tpu_custom_call.1
= control target key start
LH: loop header
LB: loop body
LE: loop exit
PB: predicated region body
PF: predicated region fallthrough
CT: control target
= control target key end

     0   :  { %10 = vsyncpa [#allocation3], 0  ;;  %s1949_s0 = inlined_call_operand.hbm [shape: bf16[512,128], index: 0, kind: input, shape index: {}]   ;;  %s1950_s1 = inlined_call_operand.hbm [shape: bf16[128,256], index: 1, kind: input, shape index: {}]   ;;  %s1951_s2 = inlined_call_operand.vmem [shape: f32[1,128], index: 2, kind: input, shape index: {}]   ;;  %s1952_s3 = inlined_call_operand.hbm [shape: bf16[512,128], index: 3, kind: output, shape index: {0}]   ;;  %s1953_s4 = inlined_call_operand.hbm [shape: f32[512,128], index: 4, kind: output, shape index: {1}]  }
   0x1   :  { %12 = vsyncpa [#allocation3 + $0x1], 0 }
   0x2   :  { %13 = vsyncpa [#allocation6], 0 }
   0x3   :  { %14 = vsyncpa [#allocation4], 0 }
   0x4   :  { %16 = vsyncpa [#allocation4 + $0x1], 0 }
   0x5   :  { %17 = vsyncpa [#allocation9], 0 }
   0x6   :  { %19 = vsyncpa [#allocation9 + $0x1], 0  ;;  %s1586_s15 = smov 0   ;;  %s1588_s16 = smov 0  }
   0x7   :  { %s1590_s17 = smov 0   ;;  %s1592_s18 = smov 0  }
   0x8 LB: > { %s1607_s19 = sadd.s32 4294967295, %s1546_s18   ;;  %s1044_s20 = sadd.s32 4294967294, %s1546_s18   ;;  %s1546_s18 = sphi %s1592_s18, %s1973_s18   ;;  %s1542_s17 = sphi %s1590_s17, %s1972_s17   ;;  %s1538_s16 = sphi %s1588_s16, %s1971_s16   ;;  %s1534_s15 = sphi %s1586_s15, %s1970_s15  }
   0x9   : > { %p45_p0 = scmp.ne.s32.totalorder %s1538_s16, %s1534_s15  ;;  %p1954_p1 = scmp.eq.s32.totalorder %s1607_s19, 0 }
   0xa   : > { %p117_p3 = scmp.eq.s32.totalorder %s1044_s20, 1  ;;  %p1045_p5 = scmp.ge.s32.totalorder %s1546_s18, 1 }
   0xb   : > { %p1616_p4 = por %p1954_p1, %p45_p0  ;;  %p150_p7 = scmp.lt.s32.totalorder %s1546_s18, 3 }
   0xc   : > { %p1621_p6 = por %p117_p3, %p45_p0  ;;  %s1548_s24 = smov [#allocation5]  }
   0xd   : > { %s1957_s21 = scalar_select %p1616_p4, 1, 0 }
   0xe   : > { %s1958_s22 = scalar_select %p1621_p6, 1, 0 }
   0xf   : > { %p1626_p8 = pnand %p1045_p5, %p150_p7  ;;  %s162_s25 = sshll.u32 %s1548_s24, 4  ;;  %s1630_s25 = int_to_ptr.vmem [resolvable:$true] %s162_s25 }
  0x10   : > { %s1642_s27 = sadd.s32 1, %s1546_s18   ;;  %s32_s28 = sadd.s32 1, %s1542_s17 }
  0x11   : > { %s1959_s23 = scalar_select %p1626_p8, 1, 0 }
  0x12   : > { %p1285_p9 = pneg %p1626_p8  ;;  %s29_s29 = ssub.s32 %s1546_s18, %s1642_s27 }
  0x13   : > { %s1386_s6 = scalar_lea.hbm %s1950_s1, 2048 }
  0x14   : > { %p1637_p11 = pnand %p1285_p9, %p1954_p1  ;;  %p1387_p12 = scmp.ne.s32.totalorder %s1950_s1, %s1386_s6 }
  0x15   : > { %p1393_p5 = scmp.lt.u32.totalorder %s1386_s6, %s1950_s1 }
  0x16   : > { %p1388_p13 = pneg %p1637_p11 }
  0x18   : > { %p1389_p0 = pnand %p1388_p13, %p1387_p12 }
  0x1a   : > { %p1390_p3 = pneg %p1389_p0 }
  0x1c   : > { %p1395_p7 = pnand %p1393_p5, %p1390_p3 }
  0x1e   : > { %1398 = shalt.err (!%p1395_p7)
}
  0x1f   : > { %s1399_s11 = scalar_lea.vmem %s1630_s25, 2048  ;;  %p1407_p2 = scmp.lt.s32.totalorder %s1630_s25, %s1630_s25 }
  0x20   : > { %p1400_p9 = scmp.ne.s32.totalorder %s1630_s25, %s1399_s11  ;;  %p1408_p6 = scmp.lt.s32.totalorder %s1399_s11, %s1399_s11 }
  0x22   : > { %p1402_p10 = pnand %p1400_p9, %p1388_p13  ;;  %p1409_p4 = por %p1408_p6, %p1407_p2 }
  0x24   : > { %p1403_p1 = pneg %p1402_p10 }
  0x26   : > { %p1410_p8 = pnand %p1409_p4, %p1403_p1 }
  0x28   : > { %1413 = shalt.err (!%p1410_p8)
}
  0x29   : > { %s1549_s12 = smov 128   ;;  %s1550_s13 = smov 8  }
  0x2a   : > { %1288 = dma.hbm_to_vmem [thread:$0]  (!%p1637_p11), %s1950_s1, 2048, %s1630_s25, [#allocation6], %s1549_s12, %s1549_s12, %s1550_s13  }
  0x2b   : > { %p30_p2 = scmp.eq.s32.totalorder %s29_s29, 0  ;;  %p39_p1 = scmp.ne.s32.totalorder %s1542_s17, %s1538_s16 }
  0x2c   : > { %p40_p4 = scmp.eq.s32.totalorder %s1546_s18, 0  ;;  %p1301_p6 = scmp.lt.s32.totalorder %s1546_s18, 2 }
  0x2d   : > { %s1673_s24 = scalar_select %p30_p2, %s1542_s17, %s32_s28  }
  0x2e   : > { %p41_p8 = por %p40_p4, %p39_p1  ;;  %p1961_p10 = scmp.eq.s32.totalorder %s1607_s19, 1 }
  0x2f   : > { %s179_s5 = sand.u32 1, %s1542_s17   ;;  %s1129_s6 = sshll.u32 %s1546_s18, 11 }
  0x30   : > { %p1677_p12 = por %p1961_p10, %p39_p1  ;;  %s1048_s7 = sshll.u32 %s179_s5, 7 }
  0x31   : > { %s1686_s9 = scalar_lea.hbm %s1949_s0, %s1129_s6  ;;  %s183_s25 = scalar_lea.vmem [#allocation2], %s1048_s7 }
  0x32   : > { %s190_s28 = sshll.u32 %s183_s25, 4  ;;  %p1688_p11 = pnand %p1301_p6, %p41_p8  ;;  %s1692_s28 = int_to_ptr.vmem [resolvable:$true] %s190_s28 }
  0x33   : > { %s1694_s10 = scalar_lea.sflag [#allocation3], %s179_s5  ;;  %s1414_s11 = scalar_lea.hbm %s1686_s9, 2048 }
  0x34   : > { %p1415_p13 = scmp.ne.s32.totalorder %s1686_s9, %s1414_s11  ;;  %p1416_p0 = pneg %p1688_p11 }
  0x35   : > { %s1419_s14 = scalar_lea.hbm %s1949_s0, 4096  ;;  %p1420_p7 = scmp.lt.u32.totalorder %s1686_s9, %s1949_s0 }
  0x36   : > { %p1417_p3 = pnand %p1416_p0, %p1415_p13  ;;  %p1421_p9 = scmp.lt.u32.totalorder %s1419_s14, %s1414_s11 }
  0x37   : > { %p1423_p1 = scmp.lt.u32.totalorder %s1414_s11, %s1686_s9 }
  0x38   : > { %p1418_p5 = pneg %p1417_p3  ;;  %p1422_p2 = por %p1421_p9, %p1420_p7 }
  0x3a   : > { %p1424_p4 = por %p1423_p1, %p1422_p2 }
  0x3c   : > { %p1425_p6 = pnand %p1424_p4, %p1418_p5 }
  0x3e   : > { %1428 = shalt.err (!%p1425_p6)
}
  0x3f   : > { %s1429_s5 = scalar_lea.vmem %s1692_s28, 2048  ;;  %s1551_s7 = smov [#allocation2]  }
  0x40   : > { %p1430_p8 = scmp.ne.s32.totalorder %s1692_s28, %s1429_s5  ;;  %s1434_s26 = sshll.u32 %s1551_s7, 4  ;;  %s1435_s26 = int_to_ptr.vmem [resolvable:$false] %s1434_s26 }
  0x41   : > { %s1436_s8 = scalar_lea.vmem %s1435_s26, 4096  ;;  %p1437_p3 = scmp.lt.s32.totalorder %s1692_s28, %s1435_s26 }
  0x42   : > { %p1432_p10 = pnand %p1430_p8, %p1416_p0  ;;  %p1438_p7 = scmp.lt.s32.totalorder %s1436_s8, %s1429_s5 }
  0x44   : > { %p1433_p13 = pneg %p1432_p10  ;;  %p1439_p9 = por %p1438_p7, %p1437_p3 }
  0x46   : > { %p1440_p2 = pnand %p1439_p9, %p1433_p13 }
  0x48   : > { %1443 = shalt.err (!%p1440_p2)
}
  0x49   : > { %s1552_s25 = smov 64   ;;  %s1553_s11 = smov 4  }
  0x4a   : > { %1292 = dma.hbm_to_vmem [thread:$0]  (!%p1688_p11), %s1686_s9, 2048, %s1692_s28, %s1694_s10, %s1552_s25, %s1552_s25, %s1553_s11  }
  0x4b   : > { %p1964_p0 = scmp.ne.s32.totalorder %s1959_s23, 0 }
  0x4c   : > { %s1725_s12 = sand.u32 (!%p1964_p0), 1, %s1538_s16   ;;  %p1965_p5 = scmp.ne.s32.totalorder (!%p1964_p0), %s1957_s21, 0 }
  0x4d   : > { %202 = sbr.rel (%p1964_p0) target bundleno = 434 (0x1b2), region = 32  ;;  %s1052_s13 = sshll.u32 (!%p1964_p0), %s1725_s12, 7 }
  0x4e   : > { %s205_s14 = scalar_lea.sflag (!%p1964_p0), [#allocation3], %s1725_s12  ;;  %s1731_s20 = scalar_lea.vmem (!%p1964_p0), [#allocation2], %s1052_s13 }
  0x54   : > { %1517 = dma.done.wait (%p1965_p5), %s205_s14, 2048  }
  0x55   : > { %1519 = vsyncadd (%p1965_p5), %s205_s14, 4294965248  ;;  %p1966_p11 = scmp.eq.s32.totalorder %s1607_s19, 0 }
  0x57   : > { %1521 = dma.done.wait (%p1966_p11), [#allocation6], 2048   ;;  %p1967_p1 = pmov %p1966_p11 }
  0x58   : > { %v1554_v0 = vmov 0   ;;  %v1346_v1 = vld [vmem:[#allocation5 + $0x4] ss:$8 sps:$4 sm:$0xff]   ;;  %v1348_v2 = vld [vmem:[#allocation5] ss:$8 sps:$4 sm:$0xff]   ;;  %v1374_v21 = vld [vmem:[%s1731_s20 + $0x10] sm:$0xff]  }
  0x59   : > { %1523 = vsyncadd (%p1967_p1), [#allocation6], 4294965248  ;;  %502 = vmatprep.mubr.bf16.mxu0 %v1554_v0  ;;  %582 = vmatprep.mubr.bf16.mxu1 %v1554_v0  ;;  %v1349_v3 = vld [vmem:[#allocation5 + $0x14] ss:$8 sps:$4 sm:$0xff]   ;;  %v1351_v4 = vld [vmem:[#allocation5 + $0x10] ss:$8 sps:$4 sm:$0xff]  }
  0x5a   : > { %470 = vmatprep.subr.bf16.mxu0 %v1346_v1  ;;  %1259 = vmatprep.subr.bf16.mxu1 %v1346_v1  ;;  %v1352_v5 = vld [vmem:[#allocation5 + $0x24] ss:$8 sps:$4 sm:$0xff]   ;;  %v1354_v6 = vld [vmem:[#allocation5 + $0x20] ss:$8 sps:$4 sm:$0xff]   ;;  %v1355_v7 = vld [vmem:[#allocation5 + $0x34] ss:$8 sps:$4 sm:$0xff]  }
  0x5b   : > { %471 = vmatpush1.bf16.msra.mxu0 %v1348_v2  ;;  %1267 = vmatpush1.bf16.msra.mxu1 %v1348_v2  ;;  %v1357_v8 = vld [vmem:[#allocation5 + $0x30] ss:$8 sps:$4 sm:$0xff]   ;;  %v1358_v9 = vld [vmem:[#allocation5 + $0x44] ss:$8 sps:$4 sm:$0xff]   ;;  %v1360_v10 = vld [vmem:[#allocation5 + $0x40] ss:$8 sps:$4 sm:$0xff]  }
  0x5c   : > { %472 = vmatprep.subr.bf16.mxu0 %v1349_v3  ;;  %1260 = vmatprep.subr.bf16.mxu1 %v1349_v3  ;;  %v1361_v11 = vld [vmem:[#allocation5 + $0x54] ss:$8 sps:$4 sm:$0xff]   ;;  %v1363_v12 = vld [vmem:[#allocation5 + $0x50] ss:$8 sps:$4 sm:$0xff]   ;;  %v1364_v13 = vld [vmem:[#allocation5 + $0x64] ss:$8 sps:$4 sm:$0xff]  }
  0x5d   : > { %v1366_v14 = vld [vmem:[#allocation5 + $0x60] ss:$8 sps:$4 sm:$0xff]   ;;  %v1367_v15 = vld [vmem:[#allocation5 + $0x74] ss:$8 sps:$4 sm:$0xff]   ;;  %v1369_v16 = vld [vmem:[#allocation5 + $0x70] ss:$8 sps:$4 sm:$0xff]  }
  0x5e   : > { %v1370_v17 = vld [vmem:[%s1731_s20] sm:$0xff]   ;;  %v1372_v19 = vld [vmem:[%s1731_s20 + $0x8] sm:$0xff]   ;;  %v1375_v22 = vld [vmem:[%s1731_s20 + $0x50] sm:$0xff]   ;;  %s1055_s21 = sshll.u32 %s1725_s12, 8  ;;  %s1791_s29 = scalar_lea.vmem [#allocation7], %s1052_s13 }
  0x5f   : > { %473 = vmatpush1.bf16.msra.mxu0 %v1351_v4  ;;  %1268 = vmatpush1.bf16.msra.mxu1 %v1351_v4  ;;  %v1371_v18 = vld [vmem:[%s1731_s20 + $0x40] sm:$0xff]   ;;  %v1373_v20 = vld [vmem:[%s1731_s20 + $0x48] sm:$0xff]   ;;  %v1376_v23 = vld [vmem:[%s1731_s20 + $0x18] sm:$0xff]   ;;  %s1781_s28 = scalar_lea.vmem [#allocation8], %s1055_s21  ;;  %s1162_s10 = sshll.u32 %s1607_s19, 11 }
  0x60   : > { %474 = vmatprep.subr.bf16.mxu0 %v1352_v5  ;;  %1261 = vmatprep.subr.bf16.mxu1 %v1352_v5  ;;  %v1377_v24 = vld [vmem:[%s1731_s20 + $0x58] sm:$0xff]   ;;  %v1378_v25 = vld [vmem:[%s1731_s20 + $0x20] sm:$0xff]   ;;  %v1380_v27 = vld [vmem:[%s1731_s20 + $0x28] sm:$0xff]   ;;  %s913_s6 = sshll.u32 %s1791_s29, 4  ;;  %s1163_s5 = sshll.u32 %s1607_s19, 12  ;;  %s1866_s6 = int_to_ptr.vmem [resolvable:$true] %s913_s6 }
  0x61   : > { %v1379_v26 = vld [vmem:[%s1731_s20 + $0x60] sm:$0xff]   ;;  %v1381_v28 = vld [vmem:[%s1731_s20 + $0x68] sm:$0xff]   ;;  %v1382_v29 = vld [vmem:[%s1731_s20 + $0x30] sm:$0xff]   ;;  %s929_s7 = sshll.u32 %s1781_s28, 4  ;;  %s1862_s25 = scalar_lea.hbm %s1952_s3, %s1162_s10  ;;  %s1873_s7 = int_to_ptr.vmem [resolvable:$true] %s929_s7 }
  0x62   : > { %v1383_v30 = vld [vmem:[%s1731_s20 + $0x70] sm:$0xff]   ;;  %v1384_v31 = vld [vmem:[%s1731_s20 + $0x38] sm:$0xff]   ;;  %v1777_v33 = vld [vmem:[%s1951_s2] ss:$0 sm:$0xff]  ;;  %s1871_s13 = scalar_lea.hbm %s1953_s4, %s1163_s5  ;;  %s900_s14 = scalar_lea.sflag [#allocation9], %s1725_s12 }
  0x63   : > { %475 = vmatpush1.bf16.msra.mxu0 %v1354_v6  ;;  %1269 = vmatpush1.bf16.msra.mxu1 %v1354_v6  ;;  %v1385_v32 = vld [vmem:[%s1731_s20 + $0x78] sm:$0xff]   ;;  %s1444_s20 = scalar_lea.vmem %s1873_s7, 4096  ;;  %s1555_s21 = smov [#allocation8]  }
  0x64   : > { %476 = vmatprep.subr.bf16.mxu0 %v1355_v7  ;;  %1262 = vmatprep.subr.bf16.mxu1 %v1355_v7  ;;  %p1445_p4 = scmp.ne.s32.totalorder %s1873_s7, %s1444_s20  ;;  %s1448_s23 = sshll.u32 %s1555_s21, 4  ;;  %s1449_s23 = int_to_ptr.vmem [resolvable:$false] %s1448_s23 }
  0x65   : > { %s1450_s9 = scalar_lea.vmem %s1449_s23, 8192  ;;  %p1451_p10 = scmp.lt.s32.totalorder %s1873_s7, %s1449_s23 }
  0x66   : > { %p1446_p6 = pnand %p1445_p4, %p1677_p12  ;;  %p1452_p13 = scmp.lt.s32.totalorder %s1450_s9, %s1444_s20 }
  0x67   : > { %477 = vmatpush1.bf16.msra.mxu0 %v1357_v8  ;;  %1270 = vmatpush1.bf16.msra.mxu1 %v1357_v8 }
  0x68   : > { %478 = vmatprep.subr.bf16.mxu0 %v1358_v9  ;;  %1263 = vmatprep.subr.bf16.mxu1 %v1358_v9  ;;  %p1447_p8 = pneg %p1446_p6  ;;  %p1453_p3 = por %p1452_p13, %p1451_p10 }
  0x6a   : > { %p1454_p7 = pnand %p1453_p3, %p1447_p8 }
  0x6b   : > { %479 = vmatpush1.bf16.msra.mxu0 %v1360_v10  ;;  %1271 = vmatpush1.bf16.msra.mxu1 %v1360_v10 }
  0x6c   : > { %480 = vmatprep.subr.bf16.mxu0 %v1361_v11  ;;  %1264 = vmatprep.subr.bf16.mxu1 %v1361_v11 }
  0x6f   : > { %481 = vmatpush1.bf16.msra.mxu0 %v1363_v12  ;;  %1272 = vmatpush1.bf16.msra.mxu1 %v1363_v12 }
  0x70   : > { %482 = vmatprep.subr.bf16.mxu0 %v1364_v13  ;;  %1265 = vmatprep.subr.bf16.mxu1 %v1364_v13 }
  0x73   : > { %483 = vmatpush1.bf16.msra.mxu0 %v1366_v14  ;;  %1273 = vmatpush1.bf16.msra.mxu1 %v1366_v14 }
  0x74   : > { %484 = vmatprep.subr.bf16.mxu0 %v1367_v15  ;;  %1266 = vmatprep.subr.bf16.mxu1 %v1367_v15 }
  0x77   : > { %485 = vmatpush1.bf16.msra.mxu0 %v1369_v16  ;;  %1274 = vmatpush1.bf16.msra.mxu1 %v1369_v16 }
  0x7a   : > { %503 = vmatmul.mubr.bf16.vlgmr.msra.gmra.mrb[0].mxu0 %v1370_v17  ;;  %583 = vmatmul.mubr.bf16.vlgmr.msra.gmra.mrb[0].mxu1 %v1371_v18 }
  0x7b   : > { %512 = vmatprep.mubr.bf16.mxu0 %v1554_v0  ;;  %592 = vmatprep.mubr.bf16.mxu1 %v1554_v0 }
  0x82   : > { %513 = vmatmul.mubr.bf16.gmra.mrb[4].mxu0 %v1372_v19  ;;  %593 = vmatmul.mubr.bf16.gmra.mrb[4].mxu1 %v1373_v20 }
  0x83   : > { %522 = vmatprep.mubr.bf16.mxu0 %v1554_v0  ;;  %602 = vmatprep.mubr.bf16.mxu1 %v1554_v0 }
  0x8a   : > { %523 = vmatmul.mubr.bf16.gmra.mrb[8].mxu0 %v1374_v21  ;;  %603 = vmatmul.mubr.bf16.gmra.mrb[8].mxu1 %v1375_v22 }
  0x8b   : > { %532 = vmatprep.mubr.bf16.mxu0 %v1554_v0  ;;  %612 = vmatprep.mubr.bf16.mxu1 %v1554_v0 }
  0x92   : > { %533 = vmatmul.mubr.bf16.gmra.mrb[12].mxu0 %v1376_v23  ;;  %613 = vmatmul.mubr.bf16.gmra.mrb[12].mxu1 %v1377_v24 }
  0x93   : > { %542 = vmatprep.mubr.bf16.mxu0 %v1554_v0  ;;  %622 = vmatprep.mubr.bf16.mxu1 %v1554_v0 }
  0x9a   : > { %543 = vmatmul.mubr.bf16.gmra.mrb[16].mxu0 %v1378_v25  ;;  %623 = vmatmul.mubr.bf16.gmra.mrb[16].mxu1 %v1379_v26 }
  0x9b   : > { %552 = vmatprep.mubr.bf16.mxu0 %v1554_v0  ;;  %632 = vmatprep.mubr.bf16.mxu1 %v1554_v0 }
  0xa2   : > { %553 = vmatmul.mubr.bf16.gmra.mrb[20].mxu0 %v1380_v27  ;;  %633 = vmatmul.mubr.bf16.gmra.mrb[20].mxu1 %v1381_v28 }
  0xa3   : > { %562 = vmatprep.mubr.bf16.mxu0 %v1554_v0  ;;  %642 = vmatprep.mubr.bf16.mxu1 %v1554_v0 }
  0xaa   : > { %563 = vmatmul.mubr.bf16.gmra.mrb[24].mxu0 %v1382_v29  ;;  %643 = vmatmul.mubr.bf16.gmra.mrb[24].mxu1 %v1383_v30 }
  0xab   : > { %572 = vmatprep.mubr.bf16.mxu0 %v1554_v0  ;;  %652 = vmatprep.mubr.bf16.mxu1 %v1554_v0 }
  0xb2   : > { %573 = vmatmul.mubr.bf16.gmra.mrb[28].mxu0 %v1384_v31  ;;  %653 = vmatmul.mubr.bf16.gmra.mrb[28].mxu1 %v1385_v32 }
 0x14d   : > { %v504_v34 = vpop.f32.mrb[0].mxu0  ;;  %v584_v35 = vpop.f32.mrb[0].mxu1 }
 0x14e   : > { %v830_v36 = vadd.f32 %v1777_v33, %v504_v34  ;;  %v846_v37 = vadd.f32 %v1777_v33, %v584_v35  ;;  %v506_v38 = vpop.f32.mrb[1].mxu0  ;;  %v586_v39 = vpop.f32.mrb[1].mxu1 }
 0x14f   : > { %v508_v40 = vpop.f32.mrb[2].mxu0  ;;  %v588_v41 = vpop.f32.mrb[2].mxu1 }
 0x150   : > { %862 = vst [vmem:[%s1781_s28] sm:$0xff] %v830_v36  ;;  %878 = vst [vmem:[%s1781_s28 + $0x80] sm:$0xff] %v846_v37  ;;  %v831_v42 = vadd.f32 %v1777_v33, %v508_v40  ;;  %v847_v43 = vadd.f32 %v1777_v33, %v588_v41  ;;  %v510_v44 = vpop.f32.mrb[3].mxu0  ;;  %v590_v45 = vpop.f32.mrb[3].mxu1 }
 0x151   : > { %v1167_v46 = vpack.c.bf16 %v510_v44, %v506_v38  ;;  %v1207_v47 = vpack.c.bf16 %v590_v45, %v586_v39 }
 0x152   : > { %863 = vst [vmem:[%s1781_s28 + $0x8] sm:$0xff] %v831_v42  ;;  %879 = vst [vmem:[%s1781_s28 + $0x88] sm:$0xff] %v847_v43 }
 0x153   : > { %1168 = vst [vmem:[%s1791_s29] sm:$0xff] %v1167_v46   ;;  %1251 = vst [vmem:[%s1791_s29 + $0x40] sm:$0xff] %v1207_v47  }
 0x155   : > { %v514_v48 = vpop.f32.mrb[4].mxu0  ;;  %v594_v49 = vpop.f32.mrb[4].mxu1 }
 0x156   : > { %v832_v50 = vadd.f32 %v1777_v33, %v514_v48  ;;  %v848_v51 = vadd.f32 %v1777_v33, %v594_v49  ;;  %v516_v52 = vpop.f32.mrb[5].mxu0  ;;  %v596_v53 = vpop.f32.mrb[5].mxu1 }
 0x157   : > { %v518_v54 = vpop.f32.mrb[6].mxu0  ;;  %v598_v55 = vpop.f32.mrb[6].mxu1 }
 0x158   : > { %864 = vst [vmem:[%s1781_s28 + $0x10] sm:$0xff] %v832_v50  ;;  %880 = vst [vmem:[%s1781_s28 + $0x90] sm:$0xff] %v848_v51  ;;  %v833_v56 = vadd.f32 %v1777_v33, %v518_v54  ;;  %v849_v57 = vadd.f32 %v1777_v33, %v598_v55  ;;  %v520_v58 = vpop.f32.mrb[7].mxu0  ;;  %v600_v59 = vpop.f32.mrb[7].mxu1 }
 0x159   : > { %v1172_v60 = vpack.c.bf16 %v520_v58, %v516_v52  ;;  %v1212_v61 = vpack.c.bf16 %v600_v59, %v596_v53 }
 0x15a   : > { %865 = vst [vmem:[%s1781_s28 + $0x18] sm:$0xff] %v833_v56  ;;  %881 = vst [vmem:[%s1781_s28 + $0x98] sm:$0xff] %v849_v57 }
 0x15b   : > { %1244 = vst [vmem:[%s1791_s29 + $0x8] sm:$0xff] %v1172_v60   ;;  %1252 = vst [vmem:[%s1791_s29 + $0x48] sm:$0xff] %v1212_v61  }
 0x15d   : > { %v524_v62 = vpop.f32.mrb[8].mxu0  ;;  %v604_v63 = vpop.f32.mrb[8].mxu1 }
 0x15e   : > { %v834_v0 = vadd.f32 %v1777_v33, %v524_v62  ;;  %v850_v1 = vadd.f32 %v1777_v33, %v604_v63  ;;  %v526_v2 = vpop.f32.mrb[9].mxu0  ;;  %v606_v3 = vpop.f32.mrb[9].mxu1 }
 0x15f   : > { %v528_v4 = vpop.f32.mrb[10].mxu0  ;;  %v608_v5 = vpop.f32.mrb[10].mxu1 }
 0x160   : > { %866 = vst [vmem:[%s1781_s28 + $0x20] sm:$0xff] %v834_v0  ;;  %882 = vst [vmem:[%s1781_s28 + $0xa0] sm:$0xff] %v850_v1  ;;  %v835_v6 = vadd.f32 %v1777_v33, %v528_v4  ;;  %v851_v7 = vadd.f32 %v1777_v33, %v608_v5  ;;  %v530_v8 = vpop.f32.mrb[11].mxu0  ;;  %v610_v9 = vpop.f32.mrb[11].mxu1 }
 0x161   : > { %v1177_v10 = vpack.c.bf16 %v530_v8, %v526_v2  ;;  %v1217_v11 = vpack.c.bf16 %v610_v9, %v606_v3 }
 0x162   : > { %867 = vst [vmem:[%s1781_s28 + $0x28] sm:$0xff] %v835_v6  ;;  %883 = vst [vmem:[%s1781_s28 + $0xa8] sm:$0xff] %v851_v7 }
 0x163   : > { %1245 = vst [vmem:[%s1791_s29 + $0x10] sm:$0xff] %v1177_v10   ;;  %1253 = vst [vmem:[%s1791_s29 + $0x50] sm:$0xff] %v1217_v11  }
 0x165   : > { %v534_v12 = vpop.f32.mrb[12].mxu0  ;;  %v614_v13 = vpop.f32.mrb[12].mxu1 }
 0x166   : > { %v836_v14 = vadd.f32 %v1777_v33, %v534_v12  ;;  %v852_v15 = vadd.f32 %v1777_v33, %v614_v13  ;;  %v536_v16 = vpop.f32.mrb[13].mxu0  ;;  %v616_v17 = vpop.f32.mrb[13].mxu1 }
 0x167   : > { %v538_v18 = vpop.f32.mrb[14].mxu0  ;;  %v618_v19 = vpop.f32.mrb[14].mxu1 }
 0x168   : > { %868 = vst [vmem:[%s1781_s28 + $0x30] sm:$0xff] %v836_v14  ;;  %884 = vst [vmem:[%s1781_s28 + $0xb0] sm:$0xff] %v852_v15  ;;  %v837_v20 = vadd.f32 %v1777_v33, %v538_v18  ;;  %v853_v21 = vadd.f32 %v1777_v33, %v618_v19  ;;  %v540_v22 = vpop.f32.mrb[15].mxu0  ;;  %v620_v23 = vpop.f32.mrb[15].mxu1 }
 0x169   : > { %v1182_v24 = vpack.c.bf16 %v540_v22, %v536_v16  ;;  %v1222_v25 = vpack.c.bf16 %v620_v23, %v616_v17 }
 0x16a   : > { %869 = vst [vmem:[%s1781_s28 + $0x38] sm:$0xff] %v837_v20  ;;  %885 = vst [vmem:[%s1781_s28 + $0xb8] sm:$0xff] %v853_v21 }
 0x16b   : > { %1246 = vst [vmem:[%s1791_s29 + $0x18] sm:$0xff] %v1182_v24   ;;  %1254 = vst [vmem:[%s1791_s29 + $0x58] sm:$0xff] %v1222_v25  }
 0x16d   : > { %v544_v26 = vpop.f32.mrb[16].mxu0  ;;  %v624_v27 = vpop.f32.mrb[16].mxu1 }
 0x16e   : > { %v838_v28 = vadd.f32 %v1777_v33, %v544_v26  ;;  %v854_v29 = vadd.f32 %v1777_v33, %v624_v27  ;;  %v546_v30 = vpop.f32.mrb[17].mxu0  ;;  %v626_v31 = vpop.f32.mrb[17].mxu1 }
 0x16f   : > { %v548_v32 = vpop.f32.mrb[18].mxu0  ;;  %v628_v34 = vpop.f32.mrb[18].mxu1 }
 0x170   : > { %870 = vst [vmem:[%s1781_s28 + $0x40] sm:$0xff] %v838_v28  ;;  %886 = vst [vmem:[%s1781_s28 + $0xc0] sm:$0xff] %v854_v29  ;;  %v839_v35 = vadd.f32 %v1777_v33, %v548_v32  ;;  %v855_v36 = vadd.f32 %v1777_v33, %v628_v34  ;;  %v550_v37 = vpop.f32.mrb[19].mxu0  ;;  %v630_v38 = vpop.f32.mrb[19].mxu1 }
 0x171   : > { %v1187_v39 = vpack.c.bf16 %v550_v37, %v546_v30  ;;  %v1227_v40 = vpack.c.bf16 %v630_v38, %v626_v31 }
 0x172   : > { %871 = vst [vmem:[%s1781_s28 + $0x48] sm:$0xff] %v839_v35  ;;  %887 = vst [vmem:[%s1781_s28 + $0xc8] sm:$0xff] %v855_v36 }
 0x173   : > { %1247 = vst [vmem:[%s1791_s29 + $0x20] sm:$0xff] %v1187_v39   ;;  %1255 = vst [vmem:[%s1791_s29 + $0x60] sm:$0xff] %v1227_v40  }
 0x175   : > { %v554_v41 = vpop.f32.mrb[20].mxu0  ;;  %v634_v42 = vpop.f32.mrb[20].mxu1 }
 0x176   : > { %v840_v43 = vadd.f32 %v1777_v33, %v554_v41  ;;  %v856_v44 = vadd.f32 %v1777_v33, %v634_v42  ;;  %v556_v45 = vpop.f32.mrb[21].mxu0  ;;  %v636_v46 = vpop.f32.mrb[21].mxu1 }
 0x177   : > { %v558_v47 = vpop.f32.mrb[22].mxu0  ;;  %v638_v48 = vpop.f32.mrb[22].mxu1 }
 0x178   : > { %872 = vst [vmem:[%s1781_s28 + $0x50] sm:$0xff] %v840_v43  ;;  %888 = vst [vmem:[%s1781_s28 + $0xd0] sm:$0xff] %v856_v44  ;;  %v841_v49 = vadd.f32 %v1777_v33, %v558_v47  ;;  %v857_v50 = vadd.f32 %v1777_v33, %v638_v48  ;;  %v560_v51 = vpop.f32.mrb[23].mxu0  ;;  %v640_v52 = vpop.f32.mrb[23].mxu1 }
 0x179   : > { %v1192_v53 = vpack.c.bf16 %v560_v51, %v556_v45  ;;  %v1232_v54 = vpack.c.bf16 %v640_v52, %v636_v46 }
 0x17a   : > { %873 = vst [vmem:[%s1781_s28 + $0x58] sm:$0xff] %v841_v49  ;;  %889 = vst [vmem:[%s1781_s28 + $0xd8] sm:$0xff] %v857_v50 }
 0x17b   : > { %1248 = vst [vmem:[%s1791_s29 + $0x28] sm:$0xff] %v1192_v53   ;;  %1256 = vst [vmem:[%s1791_s29 + $0x68] sm:$0xff] %v1232_v54  }
 0x17d   : > { %v564_v55 = vpop.f32.mrb[24].mxu0  ;;  %v644_v56 = vpop.f32.mrb[24].mxu1 }
 0x17e   : > { %v842_v57 = vadd.f32 %v1777_v33, %v564_v55  ;;  %v858_v58 = vadd.f32 %v1777_v33, %v644_v56  ;;  %v566_v59 = vpop.f32.mrb[25].mxu0  ;;  %v646_v60 = vpop.f32.mrb[25].mxu1 }
 0x17f   : > { %v568_v61 = vpop.f32.mrb[26].mxu0  ;;  %v648_v62 = vpop.f32.mrb[26].mxu1 }
 0x180   : > { %874 = vst [vmem:[%s1781_s28 + $0x60] sm:$0xff] %v842_v57  ;;  %890 = vst [vmem:[%s1781_s28 + $0xe0] sm:$0xff] %v858_v58  ;;  %v843_v63 = vadd.f32 %v1777_v33, %v568_v61  ;;  %v859_v0 = vadd.f32 %v1777_v33, %v648_v62  ;;  %v570_v1 = vpop.f32.mrb[27].mxu0  ;;  %v650_v2 = vpop.f32.mrb[27].mxu1 }
 0x181   : > { %v1197_v3 = vpack.c.bf16 %v570_v1, %v566_v59  ;;  %v1237_v4 = vpack.c.bf16 %v650_v2, %v646_v60 }
 0x182   : > { %875 = vst [vmem:[%s1781_s28 + $0x68] sm:$0xff] %v843_v63  ;;  %891 = vst [vmem:[%s1781_s28 + $0xe8] sm:$0xff] %v859_v0 }
 0x183   : > { %1249 = vst [vmem:[%s1791_s29 + $0x30] sm:$0xff] %v1197_v3   ;;  %1257 = vst [vmem:[%s1791_s29 + $0x70] sm:$0xff] %v1237_v4  }
 0x185   : > { %v574_v5 = vpop.f32.mrb[28].mxu0  ;;  %v654_v6 = vpop.f32.mrb[28].mxu1 }
 0x186   : > { %v844_v7 = vadd.f32 %v1777_v33, %v574_v5  ;;  %v860_v8 = vadd.f32 %v1777_v33, %v654_v6  ;;  %v576_v9 = vpop.f32.mrb[29].mxu0  ;;  %v656_v10 = vpop.f32.mrb[29].mxu1 }
 0x187   : > { %v578_v11 = vpop.f32.mrb[30].mxu0  ;;  %v658_v12 = vpop.f32.mrb[30].mxu1 }
 0x188   : > { %876 = vst [vmem:[%s1781_s28 + $0x70] sm:$0xff] %v844_v7  ;;  %892 = vst [vmem:[%s1781_s28 + $0xf0] sm:$0xff] %v860_v8  ;;  %v845_v13 = vadd.f32 %v1777_v33, %v578_v11  ;;  %v861_v14 = vadd.f32 %v1777_v33, %v658_v12  ;;  %v580_v15 = vpop.f32.mrb[31].mxu0  ;;  %v660_v16 = vpop.f32.mrb[31].mxu1 }
 0x189   : > { %v1202_v17 = vpack.c.bf16 %v580_v15, %v576_v9  ;;  %v1242_v18 = vpack.c.bf16 %v660_v16, %v656_v10 }
 0x18a   : > { %877 = vst [vmem:[%s1781_s28 + $0x78] sm:$0xff] %v845_v13  ;;  %893 = vst [vmem:[%s1781_s28 + $0xf8] sm:$0xff] %v861_v14 }
 0x18b   : > { %1250 = vst [vmem:[%s1791_s29 + $0x38] sm:$0xff] %v1202_v17   ;;  %1258 = vst [vmem:[%s1791_s29 + $0x78] sm:$0xff] %v1242_v18  }
 0x18c   : > { %1457 = shalt.err (!%p1454_p7)
}
 0x18d   : > { %s1458_s28 = scalar_lea.hbm %s1871_s13, 4096  ;;  %s1462_s5 = scalar_lea.hbm %s1953_s4, 8192 }
 0x18e   : > { %p1459_p9 = scmp.ne.s32.totalorder %s1871_s13, %s1458_s28  ;;  %p1463_p5 = scmp.lt.u32.totalorder %s1871_s13, %s1953_s4 }
 0x18f   : > { %p1464_p11 = scmp.lt.u32.totalorder %s1462_s5, %s1458_s28  ;;  %p1466_p4 = scmp.lt.u32.totalorder %s1458_s28, %s1871_s13 }
 0x190   : > { %p1460_p2 = pnand %p1459_p9, %p1677_p12 }
 0x191   : > { %p1465_p1 = por %p1464_p11, %p1463_p5 }
 0x192   : > { %p1461_p0 = pneg %p1460_p2 }
 0x193   : > { %p1467_p6 = por %p1466_p4, %p1465_p1 }
 0x195   : > { %p1468_p8 = pnand %p1467_p6, %p1461_p0 }
 0x197   : > { %1471 = shalt.err (!%p1468_p8)
}
 0x198   : > { %s1556_s19 = smov 128   ;;  %s1557_s11 = smov 8  }
 0x199   : > { %1282 = dma.vmem_to_hbm [thread:$0]  (%p1677_p12), %s1873_s7, 4096, %s1871_s13, %s900_s14, %s1556_s19, %s1556_s19, %s1557_s11  }
 0x19a   : > { %s895_s20 = scalar_lea.sflag [#allocation4], %s1725_s12  ;;  %s1472_s21 = scalar_lea.vmem %s1866_s6, 2048 }
 0x19b   : > { %p1473_p10 = scmp.ne.s32.totalorder %s1866_s6, %s1472_s21  ;;  %s1558_s23 = smov [#allocation7]  }
 0x19c   : > { %s1476_s9 = sshll.u32 %s1558_s23, 4  ;;  %s1477_s9 = int_to_ptr.vmem [resolvable:$false] %s1476_s9 }
 0x19d   : > { %p1474_p13 = pnand %p1473_p10, %p1677_p12  ;;  %s1478_s28 = scalar_lea.vmem %s1477_s9, 4096 }
 0x19e   : > { %p1479_p7 = scmp.lt.s32.totalorder %s1866_s6, %s1477_s9  ;;  %p1480_p9 = scmp.lt.s32.totalorder %s1478_s28, %s1472_s21 }
 0x19f   : > { %p1475_p3 = pneg %p1474_p13 }
 0x1a0   : > { %p1481_p2 = por %p1480_p9, %p1479_p7 }
 0x1a2   : > { %p1482_p0 = pnand %p1481_p2, %p1475_p3 }
 0x1a4   : > { %1485 = shalt.err (!%p1482_p0)
}
 0x1a5   : > { %s1486_s7 = scalar_lea.hbm %s1862_s25, 2048  ;;  %s1490_s29 = scalar_lea.hbm %s1952_s3, 4096 }
 0x1a6   : > { %p1487_p5 = scmp.ne.s32.totalorder %s1862_s25, %s1486_s7  ;;  %p1491_p4 = scmp.lt.u32.totalorder %s1862_s25, %s1952_s3 }
 0x1a7   : > { %p1492_p6 = scmp.lt.u32.totalorder %s1490_s29, %s1486_s7  ;;  %p1494_p10 = scmp.lt.u32.totalorder %s1486_s7, %s1862_s25 }
 0x1a8   : > { %p1488_p11 = pnand %p1487_p5, %p1677_p12 }
 0x1a9   : > { %p1493_p8 = por %p1492_p6, %p1491_p4 }
 0x1aa   : > { %p1489_p1 = pneg %p1488_p11 }
 0x1ab   : > { %p1495_p13 = por %p1494_p10, %p1493_p8 }
 0x1ad   : > { %p1496_p3 = pnand %p1495_p13, %p1489_p1 }
 0x1af   : > { %1499 = shalt.err (!%p1496_p3)
}
 0x1b0   : > { %s1559_s26 = smov 64   ;;  %s1560_s8 = smov 4  }
 0x1b1   : > { %1281 = dma.vmem_to_hbm [thread:$0]  (%p1677_p12), %s1866_s6, 2048, %s1862_s25, %s895_s20, %s1559_s26, %s1559_s26, %s1560_s8  }
 0x1b2 PF: > { %s944_s19 = sand.u32 1, %s1534_s15   ;;  %p1968_p7 = scmp.ne.s32.totalorder %s1958_s22, 0 }
 0x1b3   : > { %p1969_p9 = scmp.ge.s32.totalorder %s1546_s18, 2  ;;  %s945_s11 = scalar_lea.sflag [#allocation4], %s944_s19 }
 0x1b5   : > { %p1294_p2 = pnand %p1969_p9, %p1968_p7 }
 0x1b7   : > { %1525 = dma.done.wait (!%p1294_p2), %s945_s11, 2048  }
 0x1b8   : > { %1527 = vsyncadd (!%p1294_p2), %s945_s11, 4294965248  ;;  %s954_s21 = scalar_lea.sflag [#allocation9], %s944_s19 }
 0x1b9   : > { %1529 = dma.done.wait (!%p1294_p2), %s954_s21, 4096  }
 0x1ba   : > { %1531 = vsyncadd (!%p1294_p2), %s954_s21, 4294963200  ;;  %p22_p12 = scmp.ge.s32.totalorder %s1642_s27, 4   ;;  %s1970_s15 = smov %s1538_s16 }
 0x1bb   : > { %s1971_s16 = smov %s1542_s17  ;;  %s1972_s17 = smov %s1673_s24 }
 0x1bc   : > { %s1973_s18 = smov %s1642_s27  ;;  %24 = sbr.rel (!%p22_p12) target bundleno = 8 (0x8), region = 98 }
 0x1c3   :  { %959 = vsyncpa [#allocation3], 1 }
 0x1c4   :  { %961 = vsyncpa [#allocation3 + $0x1], 1 }
 0x1c5   :  { %962 = vsyncpa [#allocation6], 1 }
 0x1c6   :  { %963 = vsyncpa [#allocation4], 1 }
 0x1c7   :  { %965 = vsyncpa [#allocation4 + $0x1], 1 }
 0x1c8   :  { %966 = vsyncpa [#allocation9], 1 }
 0x1c9   :  { %968 = vsyncpa [#allocation9 + $0x1], 1 }

</bundles_post_ra>
